<compile_context>
chip_gen: v7x
topology: tpu7x:2x2x1
jax: 0.10.0
libtpu: 0.0.40
codegen_flags: <defaults>
</compile_context>

<pallas_src>
import jax
import jax.numpy as jnp
from jax.experimental import pallas as pl
from jax.experimental.pallas import tpu as pltpu


def _round_up(x, m):
    return ((x + m - 1) // m) * m


# --------------------------------------------------------------------------- #
# Kernel body
# --------------------------------------------------------------------------- #
def _ffn_kernel(x_ref, w1_ref, b1_ref, w2_ref, b2_ref, o_ref, acc_ref):
    hk = pl.program_id(1)

    @pl.when(hk == 0)
    def _init():
        acc_ref[...] = jnp.zeros_like(acc_ref)

    # First matmul on this hidden chunk: (tm, E) @ (E, th) -> f32 on the MXU.
    h = jnp.dot(x_ref[...], w1_ref[...], preferred_element_type=jnp.float32)
    h = jnp.maximum(h + b1_ref[...], 0.0)                  # bias + ReLU
    # Second matmul: (tm, th) @ (th, E), accumulated in the f32 scratch.
    acc_ref[...] += jnp.dot(h.astype(w2_ref.dtype), w2_ref[...],
                            preferred_element_type=jnp.float32)

    @pl.when(hk == pl.num_programs(1) - 1)
    def _finish():
        # b2 added exactly once; Dropout(p=0.0) is the identity.
        # TODO(synk): for p > 0 (training) add pltpu.prng_seed/prng_random_bits
        #             masking + 1/(1-p) scaling here.
        o_ref[...] = (acc_ref[...] + b2_ref[...]).astype(o_ref.dtype)


# --------------------------------------------------------------------------- #
# Generation-aware sizing helpers
# --------------------------------------------------------------------------- #
def _tpu_vmem_budget_and_cores():
    """Usable VMEM budget (bytes, ~75% of physical) and TensorCores per chip."""
    kind = ""
    try:
        kind = jax.devices()[0].device_kind.lower()
    except Exception:
        pass
    multi_core = "v7" in kind          # v7x: 2 TCs/chip, 64 MiB VMEM per TC
    phys = None
    try:
        phys = int(pltpu.get_tpu_info().vmem_capacity_bytes)
    except Exception:
        phys = None
    if phys is None or phys <= 0:
        phys = (64 << 20) if multi_core else (128 << 20)
    return int(phys * 3 // 4), (2 if multi_core else 1)


def _vmem_need(tm, th, e_pad, pb, ob):
    """Double-buffered per-step tiles + f32 accumulator, in bytes."""
    per_step = (tm * e_pad * pb        # x row tile
                + e_pad * th * pb      # W1 chunk
                + th * e_pad * pb      # W2 chunk
                + th * 4               # b1 chunk (f32)
                + e_pad * 4            # b2 (f32)
                + tm * e_pad * ob)     # output tile
    return 2 * per_step + tm * e_pad * 4


# --------------------------------------------------------------------------- #
# Wrapper
# --------------------------------------------------------------------------- #
def feed_forward(x, w1, b1, w2, b2, *, row_tile=512, hidden_tile=1024,
                 param_dtype=jnp.bfloat16, out_dtype=None):
    """Linear(E, 4E) -> ReLU -> Linear(4E, E) -> Dropout(0.0) on (B, T, E) input.

    Args:
      x:  (B, T, E) float32
      w1: (E, 4E), b1: (4E,)   stored as (in, out); y = x @ W + b
      w2: (4E, E), b2: (E,)
      out_dtype: output dtype (default x.dtype; pass jnp.bfloat16 to halve
                 writeback + output-tile VMEM when downstream accepts it)
    Returns: (B, T, E) in out_dtype.
    """
    assert row_tile % 16 == 0 and hidden_tile % 128 == 0
    B, T, E = x.shape
    H = w1.shape[1]
    M = B * T
    out_dtype = x.dtype if out_dtype is None else out_dtype

    vmem_budget, num_cores = _tpu_vmem_budget_and_cores()

    E_pad = _round_up(E, 128)                       # lane-dense output stores
    pb = jnp.dtype(param_dtype).itemsize
    ob = jnp.dtype(out_dtype).itemsize

    # Row tile: as large as possible (sets FLOPs/byte); multiple of 16 for bf16.
    tm = min(row_tile, _round_up(M, 16))
    # v7x: keep >= 2 row tiles so the "parallel" axis shards across both TCs.
    if num_cores > 1 and M > 16 and _round_up(M, tm) // tm < 2:
        tm = max(16, _round_up((M + num_cores - 1) // num_cores, 16))

    # Hidden tile: start large, shrink th (not tm) until VMEM fits the budget.
    th = min(hidden_tile, _round_up(H, 128))
    while _vmem_need(tm, th, E_pad, pb, ob) > vmem_budget and th > 128:
        th = max(128, th // 2)
    while _vmem_need(tm, th, E_pad, pb, ob) > vmem_budget and tm > 16:
        tm = max(16, ((tm // 2) // 16) * 16)

    M_pad = _round_up(M, tm)
    H_pad = _round_up(_round_up(H, 128), th)

    def pad2d(a, rows, cols):
        pr, pc = rows - a.shape[0], cols - a.shape[1]
        return jnp.pad(a, ((0, pr), (0, pc))) if (pr or pc) else a

    x_p = pad2d(x.reshape(M, E), M_pad, E_pad).astype(param_dtype)
    w1_p = pad2d(w1, E_pad, H_pad).astype(param_dtype)
    # Pre-block W1 once into (H_pad//th, E_pad, th): each per-step chunk DMA is
    # fully contiguous (a column slice of row-major W1 would be strided).
    w1_blk = w1_p.reshape(E_pad, H_pad // th, th).transpose(1, 0, 2)
    w2_p = pad2d(w2, H_pad, E_pad).astype(param_dtype)
    b1_p = pad2d(b1.reshape(1, H).astype(jnp.float32), 1, H_pad)
    b2_p = pad2d(b2.reshape(1, E).astype(jnp.float32), 1, E_pad)

    n_row_tiles = M_pad // tm
    n_hid_tiles = H_pad // th
    grid = (n_row_tiles, n_hid_tiles)

    need = _vmem_need(tm, th, E_pad, pb, ob)
    vmem_limit = int(min(max(int(need * 1.25), 16 << 20), vmem_budget))

    # Honest HBM traffic: weights (and b1) are re-streamed once per row tile.
    weight_bytes = (w1_blk.size + w2_p.size) * pb + b1_p.size * 4
    cost = pl.CostEstimate(
        flops=int(4 * M_pad * E_pad * H_pad),        # two matmuls, 2*M*E*H each
        transcendentals=0,
        bytes_accessed=int(x_p.size * pb
                           + weight_bytes * n_row_tiles
                           + b2_p.size * 4
                           + M_pad * E_pad * ob),
    )

    out_p = pl.pallas_call(
        _ffn_kernel,
        out_shape=jax.ShapeDtypeStruct((M_pad, E_pad), out_dtype),
        grid_spec=pltpu.PrefetchScalarGridSpec(
            num_scalar_prefetch=0,
            grid=grid,
            in_specs=[
                pl.BlockSpec((tm, E_pad),       lambda mi, hk: (mi, 0)),     # x rows
                pl.BlockSpec((None, E_pad, th), lambda mi, hk: (hk, 0, 0)),  # W1 chunk (pre-blocked)
                pl.BlockSpec((1, th),           lambda mi, hk: (0, hk)),     # b1 chunk
                pl.BlockSpec((th, E_pad),       lambda mi, hk: (hk, 0)),     # W2 chunk
                pl.BlockSpec((1, E_pad),        lambda mi, hk: (0, 0)),      # b2 (constant)
            ],
            out_specs=pl.BlockSpec((tm, E_pad), lambda mi, hk: (mi, 0)),
            scratch_shapes=[pltpu.VMEM((tm, E_pad), jnp.float32)],
        ),
        compiler_params=pltpu.CompilerParams(
            dimension_semantics=("parallel", "arbitrary"),
            vmem_limit_bytes=vmem_limit,
        ),
        cost_estimate=cost,
    )(x_p, w1_blk, b1_p, w2_p, b2_p)

    return out_p[:M, :E].reshape(B, T, E)


def init_params(key, n_embeddings):
    """Deterministic init matching nn.Linear's default U(-1/sqrt(fan_in), 1/sqrt(fan_in))."""
    E = n_embeddings
    H = 4 * E
    k1, k2, k3, k4 = jax.random.split(key, 4)
    bound1 = 1.0 / jnp.sqrt(E)
    bound2 = 1.0 / jnp.sqrt(H)
    w1 = jax.random.uniform(k1, (E, H), jnp.float32, -bound1, bound1)
    b1 = jax.random.uniform(k2, (H,), jnp.float32, -bound1, bound1)
    w2 = jax.random.uniform(k3, (H, E), jnp.float32, -bound2, bound2)
    b2 = jax.random.uniform(k4, (E,), jnp.float32, -bound2, bound2)
    return w1, b1, w2, b2


if __name__ == "__main__":
    key = jax.random.PRNGKey(0)
    k_x, k_p = jax.random.split(key)

    B, T, E = 2, 8, 32          # (batch, seq, n_embeddings)
    x = jax.random.normal(k_x, (B, T, E), dtype=jnp.float32)
    w1, b1, w2, b2 = init_params(k_p, E)

    out = feed_forward(x, w1, b1, w2, b2)
    jax.block_until_ready(out)

    # Reference in plain JAX with the same precision flow
    # (bf16 operands, f32 accumulation).
    pd = jnp.bfloat16
    xf = x.reshape(-1, E).astype(pd)
    h = jnp.maximum(
        jnp.dot(xf, w1.astype(pd), preferred_element_type=jnp.float32) + b1, 0.0)
    ref = jnp.dot(h.astype(pd), w2.astype(pd),
                  preferred_element_type=jnp.float32) + b2
    ref = ref.reshape(B, T, E)

    assert out.shape == (B, T, E) and out.dtype == x.dtype
    assert jnp.allclose(out, ref, atol=2e-2, rtol=2e-2), \
        float(jnp.max(jnp.abs(out - ref)))
    print("KERNEL_OK")
</pallas_src>

<mosaic_0001>
module attributes {stable_mosaic.version = 11 : i64} {
  func.func @_ffn_kernel(%arg0: i32, %arg1: i32, %arg2: memref<16x128xbf16, #tpu.memory_space<vmem>>, %arg3: memref<1x128x128xbf16, #tpu.memory_space<vmem>>, %arg4: memref<1x128xf32, #tpu.memory_space<vmem>>, %arg5: memref<128x128xbf16, #tpu.memory_space<vmem>>, %arg6: memref<1x128xf32, #tpu.memory_space<vmem>>, %arg7: memref<16x128xf32, #tpu.memory_space<vmem>>, %arg8: memref<16x128xf32, #tpu.memory_space<vmem>>) attributes {dimension_semantics = [#tpu.dimension_semantics<parallel>, #tpu.dimension_semantics<arbitrary>], iteration_bounds = array<i64: 1, 1>, scalar_prefetch = 0 : i64, scratch_operands = 1 : i64, tpu.core_type = #tpu.core_type<tc>, window_params = [{transform_indices = @transform_0, window_bounds = array<i64: 16, 128>}, {transform_indices = @transform_1, window_bounds = array<i64: 1, 128, 128>}, {transform_indices = @transform_2, window_bounds = array<i64: 1, 128>}, {transform_indices = @transform_3, window_bounds = array<i64: 128, 128>}, {pipeline_mode = #tpu.pipeline_mode<synchronous>, transform_indices = @transform_4, window_bounds = array<i64: 1, 128>}, {transform_indices = @transform_5, window_bounds = array<i64: 16, 128>}]} {
    %c0_i32 = arith.constant 0 : i32
    %0 = arith.cmpi eq, %arg1, %c0_i32 : i32
    %1 = arith.extui %0 : i1 to i32
    %c0_i32_0 = arith.constant 0 : i32
    %2 = arith.cmpi ne, %1, %c0_i32_0 : i32
    scf.if %2 {
      %cst_17 = arith.constant 0.000000e+00 : f32
      %21 = vector.broadcast %cst_17 : f32 to vector<16x128xf32>
      %c0_18 = arith.constant 0 : index
      %c0_19 = arith.constant 0 : index
      %22 = vector.load %arg8[%c0_18, %c0_19] : memref<16x128xf32, #tpu.memory_space<vmem>>, vector<16x128xf32>
      tpu.vector_store %arg8[%c0_18, %c0_19], %21 {strides = array<i32>} : memref<16x128xf32, #tpu.memory_space<vmem>>, vector<16x128xf32>,
    } else {
    }
    %c0 = arith.constant 0 : index
    %c0_1 = arith.constant 0 : index
    %3 = vector.load %arg2[%c0, %c0_1] : memref<16x128xbf16, #tpu.memory_space<vmem>>, vector<16x128xbf16>
    %c0_2 = arith.constant 0 : index
    %c0_3 = arith.constant 0 : index
    %c0_4 = arith.constant 0 : index
    %4 = vector.load %arg3[%c0_2, %c0_3, %c0_4] : memref<1x128x128xbf16, #tpu.memory_space<vmem>>, vector<1x128x128xbf16>
    %5 = vector.shape_cast %4 : vector<1x128x128xbf16> to vector<128x128xbf16>
    %cst = arith.constant dense<0.000000e+00> : vector<16x128xf32>
    %6 = tpu.matmul %3, %5, %cst {dimension_numbers = #tpu.dot_dimension_numbers<[1], [0], [0], [1], [0, 0, 1, 1], [], []>} : vector<16x128xbf16>, vector<128x128xbf16>, vector<16x128xf32> -> vector<16x128xf32>
    %c0_5 = arith.constant 0 : index
    %c0_6 = arith.constant 0 : index
    %7 = vector.load %arg4[%c0_5, %c0_6] : memref<1x128xf32, #tpu.memory_space<vmem>>, vector<1x128xf32>
    %8 = vector.broadcast %7 : vector<1x128xf32> to vector<16x128xf32>
    %9 = arith.addf %6, %8 : vector<16x128xf32>
    %cst_7 = arith.constant 0.000000e+00 : f32
    %10 = vector.broadcast %cst_7 : f32 to vector<16x128xf32>
    %11 = arith.maximumf %9, %10 : vector<16x128xf32>
    %c0_8 = arith.constant 0 : index
    %c0_9 = arith.constant 0 : index
    %12 = vector.load %arg8[%c0_8, %c0_9] : memref<16x128xf32, #tpu.memory_space<vmem>>, vector<16x128xf32>
    %13 = arith.truncf %11 : vector<16x128xf32> to vector<16x128xbf16>
    %c0_10 = arith.constant 0 : index
    %c0_11 = arith.constant 0 : index
    %14 = vector.load %arg5[%c0_10, %c0_11] : memref<128x128xbf16, #tpu.memory_space<vmem>>, vector<128x128xbf16>
    %cst_12 = arith.constant dense<0.000000e+00> : vector<16x128xf32>
    %15 = tpu.matmul %13, %14, %cst_12 {dimension_numbers = #tpu.dot_dimension_numbers<[1], [0], [0], [1], [0, 0, 1, 1], [], []>} : vector<16x128xbf16>, vector<128x128xbf16>, vector<16x128xf32> -> vector<16x128xf32>
    %16 = arith.addf %12, %15 : vector<16x128xf32>
    %c0_13 = arith.constant 0 : index
    %c0_14 = arith.constant 0 : index
    %17 = vector.load %arg8[%c0_13, %c0_14] : memref<16x128xf32, #tpu.memory_space<vmem>>, vector<16x128xf32>
    tpu.vector_store %arg8[%c0_13, %c0_14], %16 {strides = array<i32>} : memref<16x128xf32, #tpu.memory_space<vmem>>, vector<16x128xf32>,
    %c0_i32_15 = arith.constant 0 : i32
    %18 = arith.cmpi eq, %arg1, %c0_i32_15 : i32
    %19 = arith.extui %18 : i1 to i32
    %c0_i32_16 = arith.constant 0 : i32
    %20 = arith.cmpi ne, %19, %c0_i32_16 : i32
    scf.if %20 {
      %c0_17 = arith.constant 0 : index
      %c0_18 = arith.constant 0 : index
      %21 = vector.load %arg8[%c0_17, %c0_18] : memref<16x128xf32, #tpu.memory_space<vmem>>, vector<16x128xf32>
      %c0_19 = arith.constant 0 : index
      %c0_20 = arith.constant 0 : index
      %22 = vector.load %arg6[%c0_19, %c0_20] : memref<1x128xf32, #tpu.memory_space<vmem>>, vector<1x128xf32>
      %23 = vector.broadcast %22 : vector<1x128xf32> to vector<16x128xf32>
      %24 = arith.addf %21, %23 : vector<16x128xf32>
      %c0_21 = arith.constant 0 : index
      %c0_22 = arith.constant 0 : index
      %25 = vector.load %arg7[%c0_21, %c0_22] : memref<16x128xf32, #tpu.memory_space<vmem>>, vector<16x128xf32>
      tpu.vector_store %arg7[%c0_21, %c0_22], %24 {strides = array<i32>} : memref<16x128xf32, #tpu.memory_space<vmem>>, vector<16x128xf32>,
    } else {
    }
    return
  }
  func.func @transform_0(%arg0: i32, %arg1: i32) -> (i32, i32) {
    %c0_i32 = arith.constant 0 : i32
    %c0_i32_0 = arith.constant 0 : i32
    return %arg0, %c0_i32 : i32, i32
  }
  func.func @transform_1(%arg0: i32, %arg1: i32) -> (i32, i32, i32) {
    %c0_i32 = arith.constant 0 : i32
    %c0_i32_0 = arith.constant 0 : i32
    %c0_i32_1 = arith.constant 0 : i32
    return %arg1, %c0_i32, %c0_i32_0 : i32, i32, i32
  }
  func.func @transform_2(%arg0: i32, %arg1: i32) -> (i32, i32) {
    %c0_i32 = arith.constant 0 : i32
    %c0_i32_0 = arith.constant 0 : i32
    return %c0_i32, %arg1 : i32, i32
  }
  func.func @transform_3(%arg0: i32, %arg1: i32) -> (i32, i32) {
    %c0_i32 = arith.constant 0 : i32
    %c0_i32_0 = arith.constant 0 : i32
    return %arg1, %c0_i32 : i32, i32
  }
  func.func @transform_4(%arg0: i32, %arg1: i32) -> (i32, i32) {
    %c0_i32 = arith.constant 0 : i32
    %c0_i32_0 = arith.constant 0 : i32
    %c0_i32_1 = arith.constant 0 : i32
    return %c0_i32, %c0_i32_0 : i32, i32
  }
  func.func @transform_5(%arg0: i32, %arg1: i32) -> (i32, i32) {
    %c0_i32 = arith.constant 0 : i32
    %c0_i32_0 = arith.constant 0 : i32
    return %arg0, %c0_i32 : i32, i32
  }
}

</mosaic_0001>

<bundles_post_ra>
// kernel: tpu_custom_call.1
= control target key start
LH: loop header
LB: loop body
LE: loop exit
PB: predicated region body
PF: predicated region fallthrough
CT: control target
= control target key end

     0   :  { %10 = vsyncpa [#allocation4], 0  ;;  %s645_s0 = inlined_call_operand.hbm [shape: bf16[16,128], index: 0, kind: input, shape index: {}]   ;;  %s646_s1 = inlined_call_operand.hbm [shape: bf16[1,128,128], index: 1, kind: input, shape index: {}]   ;;  %s647_s2 = inlined_call_operand.vmem [shape: f32[1,128], index: 2, kind: input, shape index: {}]   ;;  %s648_s3 = inlined_call_operand.hbm [shape: bf16[128,128], index: 3, kind: input, shape index: {}]   ;;  %s649_s4 = inlined_call_operand.vmem [shape: f32[1,128], index: 4, kind: input, shape index: {}]   ;;  %s650_s5 = inlined_call_operand.hbm [shape: f32[16,128], index: 5, kind: output, shape index: {}]  }
   0x1   :  { %11 = vsyncpa [#allocation7], 0 }
   0x2   :  { %12 = vsyncpa [#allocation5], 0  ;;  %s535_s18 = smov [#allocation6]   ;;  %s536_s20 = smov [#allocation3]  }
   0x3   :  { %s30_s19 = sshll.u32 %s535_s18, 4  ;;  %s18_s21 = sshll.u32 %s536_s20, 4  ;;  %s31_s19 = int_to_ptr.vmem [resolvable:$true] %s30_s19  ;;  %s575_s21 = int_to_ptr.vmem [resolvable:$true] %s18_s21 }
   0x4   :  { %s441_s24 = scalar_lea.hbm %s646_s1, 1024 }
   0x5   :  { %p442_p0 = scmp.ne.s32.totalorder %s646_s1, %s441_s24  ;;  %p445_p1 = scmp.lt.u32.totalorder %s441_s24, %s646_s1 }
   0x7   :  { %p447_p2 = pnand %p445_p1, %p442_p0 }
   0x9   :  { %450 = shalt.err (!%p447_p2)
}
   0xa   :  { %s451_s29 = scalar_lea.vmem %s31_s19, 1024  ;;  %p456_p4 = scmp.lt.s32.totalorder %s31_s19, %s31_s19 }
   0xb   :  { %p452_p3 = scmp.ne.s32.totalorder %s31_s19, %s451_s29  ;;  %p457_p5 = scmp.lt.s32.totalorder %s451_s29, %s451_s29 }
   0xd   :  { %p458_p6 = por %p457_p5, %p456_p4 }
   0xf   :  { %p459_p7 = pnand %p458_p6, %p452_p3 }
  0x11   :  { %462 = shalt.err (!%p459_p7)
}
  0x12   :  { %s537_s30 = smov 64   ;;  %s538_s6 = smov 4  }
  0x13   :  { %36 = dma.hbm_to_vmem [thread:$0]  %s646_s1, 1024, %s31_s19, [#allocation7], %s537_s30, %s537_s30, %s538_s6  }
  0x14   :  { %s463_s11 = scalar_lea.hbm %s645_s0, 128 }
  0x15   :  { %p464_p8 = scmp.ne.s32.totalorder %s645_s0, %s463_s11  ;;  %p467_p9 = scmp.lt.u32.totalorder %s463_s11, %s645_s0 }
  0x17   :  { %p469_p10 = pnand %p467_p9, %p464_p8 }
  0x19   :  { %472 = shalt.err (!%p469_p10)
}
  0x1a   :  { %s473_s16 = scalar_lea.vmem %s575_s21, 128  ;;  %p478_p12 = scmp.lt.s32.totalorder %s575_s21, %s575_s21 }
  0x1b   :  { %p474_p11 = scmp.ne.s32.totalorder %s575_s21, %s473_s16  ;;  %p479_p13 = scmp.lt.s32.totalorder %s473_s16, %s473_s16 }
  0x1d   :  { %p480_p0 = por %p479_p13, %p478_p12 }
  0x1f   :  { %p481_p1 = pnand %p480_p0, %p474_p11 }
  0x21   :  { %484 = shalt.err (!%p481_p1)
}
  0x22   :  { %24 = dma.hbm_to_vmem [thread:$0]  %s645_s0, 128, %s575_s21, [#allocation4], %s537_s30, %s537_s30, %s538_s6  }
  0x23   :  { %s539_s18 = smov [#allocation8]   ;;  %s485_s23 = scalar_lea.hbm %s648_s3, 1024 }
  0x24   :  { %s44_s19 = sshll.u32 %s539_s18, 4  ;;  %p486_p2 = scmp.ne.s32.totalorder %s648_s3, %s485_s23  ;;  %s45_s19 = int_to_ptr.vmem [resolvable:$true] %s44_s19 }
  0x25   :  { %p489_p3 = scmp.lt.u32.totalorder %s485_s23, %s648_s3 }
  0x27   :  { %p491_p4 = pnand %p489_p3, %p486_p2 }
  0x29   :  { %494 = shalt.err (!%p491_p4)
}
  0x2a   :  { %s495_s28 = scalar_lea.vmem %s45_s19, 1024  ;;  %p500_p6 = scmp.lt.s32.totalorder %s45_s19, %s45_s19 }
  0x2b   :  { %p496_p5 = scmp.ne.s32.totalorder %s45_s19, %s495_s28  ;;  %p501_p7 = scmp.lt.s32.totalorder %s495_s28, %s495_s28 }
  0x2d   :  { %p502_p8 = por %p501_p7, %p500_p6 }
  0x2f   :  { %p503_p9 = pnand %p502_p8, %p496_p5 }
  0x31   :  { %506 = shalt.err (!%p503_p9)
}
  0x32   :  { %50 = dma.hbm_to_vmem [thread:$0]  %s648_s3, 1024, %s45_s19, [#allocation7], %s537_s30, %s537_s30, %s538_s6  }
  0x33   :  { %529 = dma.done.wait [#allocation4], 128  }
  0x34   :  { %530 = vsyncadd [#allocation4], 4294967168 }
  0x35   :  { %531 = dma.done.wait [#allocation7], 2048  }
  0x36   :  { %532 = vsyncadd [#allocation7], 4294965248  ;;  %v540_v0 = vmov 0.0   ;;  %vm541_vm0 = vmmov 0   ;;  %v424_v1 = vld [vmem:[#allocation6] sm:$0xff]   ;;  %v425_v2 = vld [vmem:[#allocation6 + $0x8] sm:$0xff]  }
  0x37   :  { %374 = vmatprep.subr.bf16.mxu0 %v540_v0  ;;  %390 = vmatprep.mubr.msk.bf16.mxu0 %vm541_vm0, %v540_v0  ;;  %v426_v3 = vld [vmem:[#allocation6 + $0x10] sm:$0xff]   ;;  %v433_v4 = vld [vmem:[#allocation8] sm:$0xff]   ;;  %v427_v5 = vld [vmem:[#allocation6 + $0x18] sm:$0xff]   ;;  %s542_s7 = smov [#allocation9]  }
  0x38   :  { %394 = vmatprep.subr.bf16.mxu1 %v540_v0  ;;  %410 = vmatprep.mubr.msk.bf16.mxu1 %vm541_vm0, %v540_v0  ;;  %v434_v6 = vld [vmem:[#allocation8 + $0x8] sm:$0xff]   ;;  %v428_v7 = vld [vmem:[#allocation6 + $0x20] sm:$0xff]   ;;  %v435_v8 = vld [vmem:[#allocation8 + $0x10] sm:$0xff]   ;;  %s324_s8 = sshll.u32 %s542_s7, 4  ;;  %s325_s8 = int_to_ptr.vmem [resolvable:$true] %s324_s8 }
  0x39   :  { %375 = vmatpush3.bf16.msra.mxu0 %v424_v1  ;;  %395 = vmatpush3.bf16.msra.mxu1 %v433_v4  ;;  %v429_v9 = vld [vmem:[#allocation6 + $0x28] sm:$0xff]   ;;  %v436_v10 = vld [vmem:[#allocation8 + $0x18] sm:$0xff]   ;;  %v430_v11 = vld [vmem:[#allocation6 + $0x30] sm:$0xff]   ;;  %p512_p11 = scmp.lt.s32.totalorder %s325_s8, %s325_s8 }
  0x3a   :  { %376 = vmatprep.subr.bf16.mxu0 %v540_v0  ;;  %396 = vmatprep.subr.bf16.mxu1 %v540_v0  ;;  %v437_v12 = vld [vmem:[#allocation8 + $0x20] sm:$0xff]   ;;  %v431_v13 = vld [vmem:[#allocation6 + $0x38] sm:$0xff]   ;;  %v438_v14 = vld [vmem:[#allocation8 + $0x28] sm:$0xff]  }
  0x3b   :  { %v432_v15 = vld [vmem:[#allocation3] sm:$0xff]   ;;  %v439_v16 = vld [vmem:[#allocation8 + $0x30] sm:$0xff]  }
  0x3c   :  { %v440_v17 = vld [vmem:[#allocation8 + $0x38] sm:$0xff]  }
  0x3d   :  { %377 = vmatpush3.bf16.msra.mxu0 %v425_v2  ;;  %397 = vmatpush3.bf16.msra.mxu1 %v434_v6  ;;  %v337_v18 = vld [vmem:[%s647_s2] ss:$0 sm:$0xff]  ;;  %s507_s2 = scalar_lea.vmem %s325_s8, 256 }
  0x3e   :  { %378 = vmatprep.subr.bf16.mxu0 %v540_v0  ;;  %398 = vmatprep.subr.bf16.mxu1 %v540_v0  ;;  %v355_v28 = vld [vmem:[%s649_s4] ss:$0 sm:$0xff]  ;;  %p508_p10 = scmp.ne.s32.totalorder %s325_s8, %s507_s2  ;;  %p513_p12 = scmp.lt.s32.totalorder %s507_s2, %s507_s2 }
  0x40   :  { %p514_p13 = por %p513_p12, %p512_p11 }
  0x41   :  { %379 = vmatpush3.bf16.msra.mxu0 %v426_v3  ;;  %399 = vmatpush3.bf16.msra.mxu1 %v435_v8 }
  0x42   :  { %380 = vmatprep.subr.bf16.mxu0 %v540_v0  ;;  %400 = vmatprep.subr.bf16.mxu1 %v540_v0  ;;  %p515_p0 = pnand %p514_p13, %p508_p10 }
  0x45   :  { %381 = vmatpush3.bf16.msra.mxu0 %v427_v5  ;;  %401 = vmatpush3.bf16.msra.mxu1 %v436_v10 }
  0x46   :  { %382 = vmatprep.subr.bf16.mxu0 %v540_v0  ;;  %402 = vmatprep.subr.bf16.mxu1 %v540_v0 }
  0x49   :  { %383 = vmatpush3.bf16.msra.mxu0 %v428_v7  ;;  %403 = vmatpush3.bf16.msra.mxu1 %v437_v12 }
  0x4a   :  { %384 = vmatprep.subr.bf16.mxu0 %v540_v0  ;;  %404 = vmatprep.subr.bf16.mxu1 %v540_v0 }
  0x4d   :  { %385 = vmatpush3.bf16.msra.mxu0 %v429_v9  ;;  %405 = vmatpush3.bf16.msra.mxu1 %v438_v14 }
  0x4e   :  { %386 = vmatprep.subr.bf16.mxu0 %v540_v0  ;;  %406 = vmatprep.subr.bf16.mxu1 %v540_v0 }
  0x51   :  { %387 = vmatpush3.bf16.msra.mxu0 %v430_v11  ;;  %407 = vmatpush3.bf16.msra.mxu1 %v439_v16 }
  0x52   :  { %388 = vmatprep.subr.bf16.mxu0 %v540_v0  ;;  %408 = vmatprep.subr.bf16.mxu1 %v540_v0 }
  0x55   :  { %389 = vmatpush3.bf16.msra.mxu0 %v431_v13  ;;  %409 = vmatpush3.bf16.msra.mxu1 %v440_v17 }
  0x58   :  { %391 = vmatmul.mubr.bf16.vlgmr.msra.gmra.mrb[0].mxu0 %v432_v15 }
 0x12b   :  { %v182_v19 = vpop.f32.mrb[0].mxu0 }
 0x12c   :  { %v183_v20 = vadd.f32 %v337_v18, %v182_v19  ;;  %v392_v21 = vpop.f32.mrb[1].mxu0 }
 0x12d   :  { %v185_v22 = vpop.f32.mrb[2].mxu0 }
 0x12e   :  { %v186_v23 = vadd.f32 %v337_v18, %v185_v22  ;;  %v393_v24 = vpop.f32.mrb[3].mxu0  ;;  %v189_v25 = vmax.f32 %v183_v20, 0.0 }
 0x130   :  { %v190_v26 = vmax.f32 %v186_v23, 0.0 }
 0x132   :  { %v193_v27 = vpack.c.bf16 %v190_v26, %v189_v25 }
 0x134   :  { %411 = vmatmul.mubr.bf16.vlgmr.msra.gmra.mrb[0].mxu1 %v193_v27 }
 0x207   :  { %v292_v29 = vpop.f32.mrb[0].mxu1 }
 0x208   :  { %v315_v30 = vadd.f32 %v355_v28, %v292_v29  ;;  %v412_v31 = vpop.f32.mrb[1].mxu1 }
 0x209   :  { %v295_v32 = vpop.f32.mrb[2].mxu1 }
 0x20a   :  { %317 = vst [vmem:[#allocation9] sm:$0xff] %v315_v30  ;;  %v316_v33 = vadd.f32 %v355_v28, %v295_v32  ;;  %v413_v34 = vpop.f32.mrb[3].mxu1 }
 0x20c   :  { %318 = vst [vmem:[#allocation9 + $0x8] sm:$0xff] %v316_v33 }
 0x20d   :  { %518 = shalt.err (!%p515_p0)
}
 0x20e   :  { %s519_s10 = scalar_lea.hbm %s650_s5, 256 }
 0x20f   :  { %p520_p1 = scmp.ne.s32.totalorder %s650_s5, %s519_s10  ;;  %p523_p2 = scmp.lt.u32.totalorder %s519_s10, %s650_s5 }
 0x211   :  { %p525_p3 = pnand %p523_p2, %p520_p1 }
 0x213   :  { %528 = shalt.err (!%p525_p3)
}
 0x214   :  { %s543_s15 = smov 128   ;;  %s544_s16 = smov 8  }
 0x215   :  { %330 = dma.vmem_to_hbm [thread:$0]  %s325_s8, 256, %s650_s5, [#allocation5], %s543_s15, %s543_s15, %s544_s16  }
 0x216   :  { %533 = dma.done.wait [#allocation5], 256  }
 0x217   :  { %534 = vsyncadd [#allocation5], 4294967040 }
 0x218   :  { %334 = vsyncpa [#allocation4], 1 }
 0x219   :  { %335 = vsyncpa [#allocation7], 1 }
 0x21a   :  { %336 = vsyncpa [#allocation5], 1 }

</bundles_post_ra>
